<compile_context>
chip_gen: v7x
topology: tpu7x:2x2x1
jax: 0.10.0
libtpu: 0.0.40
codegen_flags: <defaults>
</compile_context>

<pallas_src>
import functools

import jax
import jax.numpy as jnp
from jax.experimental import pallas as pl
from jax.experimental.pallas import tpu as pltpu


def _round_up(x, m):
    return ((x + m - 1) // m) * m


def _lora_linear_kernel(x_ref, wt_ref, bias_ref, at_ref, bt_ref, o_ref,
                        acc_ref, xa_ref):
    """Fused tiled: o = x @ Wt + bias + (x @ At) @ Bt, K-reduction on grid axis 2."""
    k = pl.program_id(2)

    @pl.when(k == 0)
    def _():
        acc_ref[...] = jnp.zeros_like(acc_ref)
        xa_ref[...] = jnp.zeros_like(xa_ref)

    x = x_ref[...]                                     # (tm, tk)
    # Base path: accumulate x_tile @ Wt_tile (row-major, MXU, f32 accumulation).
    acc_ref[...] += jnp.dot(x, wt_ref[...], preferred_element_type=jnp.float32)
    # LoRA path: accumulate x_tile @ At_tile into tiny (tm, rank_p) scratch.
    xa_ref[...] += jnp.dot(x, at_ref[...], preferred_element_type=jnp.float32)

    @pl.when(k == pl.num_programs(2) - 1)
    def _():
        lora = jnp.dot(xa_ref[...], bt_ref[...].astype(jnp.float32),
                       preferred_element_type=jnp.float32)     # (tm, tn)
        out = acc_ref[...] + lora + bias_ref[...].astype(jnp.float32)
        o_ref[...] = out.astype(o_ref.dtype)


def lora_linear(x, W, bias, A, B, *, tm=256, tn=256, tk=512):
    """y = x @ W.T + bias + (x @ A.T) @ B.T via a tiled Pallas TPU kernel.

    x: (batch, in), W: (out, in), bias: (out,), A: (rank, in), B: (out, rank).
    """
    batch, in_f = x.shape
    out_f, _ = W.shape
    rank = A.shape[0]

    # Pre-transpose once in the wrapper -> kernel does plain row-major matmuls.
    Wt = W.T                      # (in, out)
    At = A.T                      # (in, rank)
    Bt = B.T                      # (rank, out)

    # Lane/sublane-friendly padded sizes; clamp tiles to the (padded) problem size.
    rank_p = _round_up(max(rank, 8), 8)
    tm = min(tm, _round_up(batch, 8))
    tn = min(tn, _round_up(out_f, 128))
    tk = min(tk, _round_up(in_f, 128))
    M = _round_up(batch, tm)
    N = _round_up(out_f, tn)
    K = _round_up(in_f, tk)

    def pad2(a, r, c):
        pr, pc = r - a.shape[0], c - a.shape[1]
        return a if (pr == 0 and pc == 0) else jnp.pad(a, ((0, pr), (0, pc)))

    x_p = pad2(x, M, K)
    Wt_p = pad2(Wt, K, N)
    At_p = pad2(At, K, rank_p)
    Bt_p = pad2(Bt, rank_p, N)
    bias_p = pad2(bias.reshape(1, out_f), 1, N)

    grid = (M // tm, N // tn, K // tk)

    itemsize = jnp.dtype(x.dtype).itemsize
    cost = pl.CostEstimate(
        flops=2 * M * N * K + 2 * M * K * rank_p + 2 * M * rank_p * N,
        transcendentals=0,
        bytes_accessed=(M * K + K * N + K * rank_p + rank_p * N + N + M * N)
        * itemsize,
    )

    out_p = pl.pallas_call(
        _lora_linear_kernel,
        out_shape=jax.ShapeDtypeStruct((M, N), x.dtype),
        grid_spec=pltpu.PrefetchScalarGridSpec(
            num_scalar_prefetch=0,
            grid=grid,
            in_specs=[
                pl.BlockSpec((tm, tk), lambda i, j, k: (i, k)),       # x
                pl.BlockSpec((tk, tn), lambda i, j, k: (k, j)),       # Wt (streamed)
                pl.BlockSpec((1, tn), lambda i, j, k: (0, j)),        # bias
                pl.BlockSpec((tk, rank_p), lambda i, j, k: (k, 0)),   # At
                pl.BlockSpec((rank_p, tn), lambda i, j, k: (0, j)),   # Bt
            ],
            out_specs=pl.BlockSpec((tm, tn), lambda i, j, k: (i, j)),
            scratch_shapes=[
                pltpu.VMEM((tm, tn), jnp.float32),       # base accumulator
                pltpu.VMEM((tm, rank_p), jnp.float32),   # LoRA xa accumulator
            ],
        ),
        compiler_params=pltpu.CompilerParams(
            dimension_semantics=("parallel", "parallel", "arbitrary"),
            vmem_limit_bytes=32 * 1024 * 1024,
        ),
        cost_estimate=cost,
    )(x_p, Wt_p, bias_p, At_p, Bt_p)

    return out_p[:batch, :out_f]


def lora_linear_ref(x, W, bias, A, B):
    """Pure-JAX reference (highest precision for a fair f32 comparison)."""
    mm = functools.partial(jnp.matmul, precision=jax.lax.Precision.HIGHEST)
    return mm(x, W.T) + bias + mm(mm(x, A.T), B.T)


if __name__ == "__main__":
    # --- Test 1: shapes matching the module spec (nn.Linear(32, 32), rank=4, B=0) ---
    batch, in_f, out_f, rank = 8, 32, 32, 4
    kx, kw, kb, ka = jax.random.split(jax.random.PRNGKey(0), 4)

    x = jax.random.normal(kx, (batch, in_f), dtype=jnp.float32)
    W = jax.random.normal(kw, (out_f, in_f), dtype=jnp.float32) * 0.1
    bias = jax.random.normal(kb, (out_f,), dtype=jnp.float32) * 0.1
    A = jax.random.normal(ka, (rank, in_f), dtype=jnp.float32)
    B = jnp.zeros((out_f, rank), dtype=jnp.float32)      # LoRA delta = 0 at init

    out = jax.block_until_ready(lora_linear(x, W, bias, A, B))
    ref = lora_linear_ref(x, W, bias, A, B)
    assert out.shape == (batch, out_f)
    assert jnp.allclose(out, ref, atol=1e-4, rtol=1e-4), "mismatch vs reference (test 1)"

    # --- Test 2: exercises multiple N and K grid tiles + non-zero LoRA B ---
    batch2, in_f2, out_f2, rank2 = 16, 640, 384, 4
    k1, k2, k3, k4, k5 = jax.random.split(jax.random.PRNGKey(1), 5)
    x2 = jax.random.normal(k1, (batch2, in_f2), dtype=jnp.float32)
    W2 = jax.random.normal(k2, (out_f2, in_f2), dtype=jnp.float32) * 0.05
    bias2 = jax.random.normal(k3, (out_f2,), dtype=jnp.float32) * 0.1
    A2 = jax.random.normal(k4, (rank2, in_f2), dtype=jnp.float32) * 0.05
    B2 = jax.random.normal(k5, (out_f2, rank2), dtype=jnp.float32) * 0.05

    out2 = jax.block_until_ready(lora_linear(x2, W2, bias2, A2, B2))
    ref2 = lora_linear_ref(x2, W2, bias2, A2, B2)
    assert out2.shape == (batch2, out_f2)
    assert jnp.allclose(out2, ref2, atol=1e-3, rtol=1e-3), "mismatch vs reference (test 2)"

    print("KERNEL_OK")
</pallas_src>

<mosaic_0001>
module attributes {stable_mosaic.version = 11 : i64} {
  func.func @_lora_linear_kernel(%arg0: i32, %arg1: i32, %arg2: i32, %arg3: memref<8x128xf32, #tpu.memory_space<vmem>>, %arg4: memref<128x128xf32, #tpu.memory_space<vmem>>, %arg5: memref<1x128xf32, #tpu.memory_space<vmem>>, %arg6: memref<128x8xf32, #tpu.memory_space<vmem>>, %arg7: memref<8x128xf32, #tpu.memory_space<vmem>>, %arg8: memref<8x128xf32, #tpu.memory_space<vmem>>, %arg9: memref<8x128xf32, #tpu.memory_space<vmem>>, %arg10: memref<8x8xf32, #tpu.memory_space<vmem>>) attributes {dimension_semantics = [#tpu.dimension_semantics<parallel>, #tpu.dimension_semantics<parallel>, #tpu.dimension_semantics<arbitrary>], iteration_bounds = array<i64: 1, 1, 1>, scalar_prefetch = 0 : i64, scratch_operands = 2 : i64, tpu.core_type = #tpu.core_type<tc>, window_params = [{transform_indices = @transform_0, window_bounds = array<i64: 8, 128>}, {transform_indices = @transform_1, window_bounds = array<i64: 128, 128>}, {transform_indices = @transform_2, window_bounds = array<i64: 1, 128>}, {transform_indices = @transform_3, window_bounds = array<i64: 128, 8>}, {transform_indices = @transform_4, window_bounds = array<i64: 8, 128>}, {transform_indices = @transform_5, window_bounds = array<i64: 8, 128>}]} {
    %c0_i32 = arith.constant 0 : i32
    %0 = arith.cmpi eq, %arg2, %c0_i32 : i32
    %1 = arith.extui %0 : i1 to i32
    %c0_i32_0 = arith.constant 0 : i32
    %2 = arith.cmpi ne, %1, %c0_i32_0 : i32
    scf.if %2 {
      %cst_17 = arith.constant 0.000000e+00 : f32
      %17 = vector.broadcast %cst_17 : f32 to vector<8x128xf32>
      %c0_18 = arith.constant 0 : index
      %c0_19 = arith.constant 0 : index
      %18 = vector.load %arg9[%c0_18, %c0_19] : memref<8x128xf32, #tpu.memory_space<vmem>>, vector<8x128xf32>
      tpu.vector_store %arg9[%c0_18, %c0_19], %17 {strides = array<i32>} : memref<8x128xf32, #tpu.memory_space<vmem>>, vector<8x128xf32>,
      %cst_20 = arith.constant 0.000000e+00 : f32
      %19 = vector.broadcast %cst_20 : f32 to vector<8x8xf32>
      %c0_21 = arith.constant 0 : index
      %c0_22 = arith.constant 0 : index
      %20 = vector.load %arg10[%c0_21, %c0_22] : memref<8x8xf32, #tpu.memory_space<vmem>>, vector<8x8xf32>
      tpu.vector_store %arg10[%c0_21, %c0_22], %19 {strides = array<i32>} : memref<8x8xf32, #tpu.memory_space<vmem>>, vector<8x8xf32>,
    } else {
    }
    %c0 = arith.constant 0 : index
    %c0_1 = arith.constant 0 : index
    %3 = vector.load %arg3[%c0, %c0_1] : memref<8x128xf32, #tpu.memory_space<vmem>>, vector<8x128xf32>
    %c0_2 = arith.constant 0 : index
    %c0_3 = arith.constant 0 : index
    %4 = vector.load %arg9[%c0_2, %c0_3] : memref<8x128xf32, #tpu.memory_space<vmem>>, vector<8x128xf32>
    %c0_4 = arith.constant 0 : index
    %c0_5 = arith.constant 0 : index
    %5 = vector.load %arg4[%c0_4, %c0_5] : memref<128x128xf32, #tpu.memory_space<vmem>>, vector<128x128xf32>
    %cst = arith.constant dense<0.000000e+00> : vector<8x128xf32>
    %6 = tpu.matmul %3, %5, %cst {dimension_numbers = #tpu.dot_dimension_numbers<[1], [0], [0], [1], [0, 0, 1, 1], [], []>} : vector<8x128xf32>, vector<128x128xf32>, vector<8x128xf32> -> vector<8x128xf32>
    %7 = arith.addf %4, %6 : vector<8x128xf32>
    %c0_6 = arith.constant 0 : index
    %c0_7 = arith.constant 0 : index
    %8 = vector.load %arg9[%c0_6, %c0_7] : memref<8x128xf32, #tpu.memory_space<vmem>>, vector<8x128xf32>
    tpu.vector_store %arg9[%c0_6, %c0_7], %7 {strides = array<i32>} : memref<8x128xf32, #tpu.memory_space<vmem>>, vector<8x128xf32>,
    %c0_8 = arith.constant 0 : index
    %c0_9 = arith.constant 0 : index
    %9 = vector.load %arg10[%c0_8, %c0_9] : memref<8x8xf32, #tpu.memory_space<vmem>>, vector<8x8xf32>
    %c0_10 = arith.constant 0 : index
    %c0_11 = arith.constant 0 : index
    %10 = vector.load %arg6[%c0_10, %c0_11] : memref<128x8xf32, #tpu.memory_space<vmem>>, vector<128x8xf32>
    %cst_12 = arith.constant dense<0.000000e+00> : vector<8x8xf32>
    %11 = tpu.matmul %3, %10, %cst_12 {dimension_numbers = #tpu.dot_dimension_numbers<[1], [0], [0], [1], [0, 0, 1, 1], [], []>} : vector<8x128xf32>, vector<128x8xf32>, vector<8x8xf32> -> vector<8x8xf32>
    %12 = arith.addf %9, %11 : vector<8x8xf32>
    %c0_13 = arith.constant 0 : index
    %c0_14 = arith.constant 0 : index
    %13 = vector.load %arg10[%c0_13, %c0_14] : memref<8x8xf32, #tpu.memory_space<vmem>>, vector<8x8xf32>
    tpu.vector_store %arg10[%c0_13, %c0_14], %12 {strides = array<i32>} : memref<8x8xf32, #tpu.memory_space<vmem>>, vector<8x8xf32>,
    %c0_i32_15 = arith.constant 0 : i32
    %14 = arith.cmpi eq, %arg2, %c0_i32_15 : i32
    %15 = arith.extui %14 : i1 to i32
    %c0_i32_16 = arith.constant 0 : i32
    %16 = arith.cmpi ne, %15, %c0_i32_16 : i32
    scf.if %16 {
      %c0_17 = arith.constant 0 : index
      %c0_18 = arith.constant 0 : index
      %17 = vector.load %arg10[%c0_17, %c0_18] : memref<8x8xf32, #tpu.memory_space<vmem>>, vector<8x8xf32>
      %c0_19 = arith.constant 0 : index
      %c0_20 = arith.constant 0 : index
      %18 = vector.load %arg7[%c0_19, %c0_20] : memref<8x128xf32, #tpu.memory_space<vmem>>, vector<8x128xf32>
      %cst_21 = arith.constant dense<0.000000e+00> : vector<8x128xf32>
      %19 = tpu.matmul %17, %18, %cst_21 {dimension_numbers = #tpu.dot_dimension_numbers<[1], [0], [0], [1], [0, 0, 1, 1], [], []>} : vector<8x8xf32>, vector<8x128xf32>, vector<8x128xf32> -> vector<8x128xf32>
      %c0_22 = arith.constant 0 : index
      %c0_23 = arith.constant 0 : index
      %20 = vector.load %arg9[%c0_22, %c0_23] : memref<8x128xf32, #tpu.memory_space<vmem>>, vector<8x128xf32>
      %21 = arith.addf %20, %19 : vector<8x128xf32>
      %c0_24 = arith.constant 0 : index
      %c0_25 = arith.constant 0 : index
      %22 = vector.load %arg5[%c0_24, %c0_25] : memref<1x128xf32, #tpu.memory_space<vmem>>, vector<1x128xf32>
      %23 = vector.broadcast %22 : vector<1x128xf32> to vector<8x128xf32>
      %24 = arith.addf %21, %23 : vector<8x128xf32>
      %c0_26 = arith.constant 0 : index
      %c0_27 = arith.constant 0 : index
      %25 = vector.load %arg8[%c0_26, %c0_27] : memref<8x128xf32, #tpu.memory_space<vmem>>, vector<8x128xf32>
      tpu.vector_store %arg8[%c0_26, %c0_27], %24 {strides = array<i32>} : memref<8x128xf32, #tpu.memory_space<vmem>>, vector<8x128xf32>,
    } else {
    }
    return
  }
  func.func @transform_0(%arg0: i32, %arg1: i32, %arg2: i32) -> (i32, i32) {
    %c0_i32 = arith.constant 0 : i32
    return %arg0, %arg2 : i32, i32
  }
  func.func @transform_1(%arg0: i32, %arg1: i32, %arg2: i32) -> (i32, i32) {
    %c0_i32 = arith.constant 0 : i32
    return %arg2, %arg1 : i32, i32
  }
  func.func @transform_2(%arg0: i32, %arg1: i32, %arg2: i32) -> (i32, i32) {
    %c0_i32 = arith.constant 0 : i32
    %c0_i32_0 = arith.constant 0 : i32
    return %c0_i32, %arg1 : i32, i32
  }
  func.func @transform_3(%arg0: i32, %arg1: i32, %arg2: i32) -> (i32, i32) {
    %c0_i32 = arith.constant 0 : i32
    %c0_i32_0 = arith.constant 0 : i32
    return %arg2, %c0_i32 : i32, i32
  }
  func.func @transform_4(%arg0: i32, %arg1: i32, %arg2: i32) -> (i32, i32) {
    %c0_i32 = arith.constant 0 : i32
    %c0_i32_0 = arith.constant 0 : i32
    return %c0_i32, %arg1 : i32, i32
  }
  func.func @transform_5(%arg0: i32, %arg1: i32, %arg2: i32) -> (i32, i32) {
    %c0_i32 = arith.constant 0 : i32
    return %arg0, %arg1 : i32, i32
  }
}

</mosaic_0001>

<bundles_post_ra>
// kernel: tpu_custom_call.1
= control target key start
LH: loop header
LB: loop body
LE: loop exit
PB: predicated region body
PF: predicated region fallthrough
CT: control target
= control target key end

     0   :  { %10 = vsyncpa [#allocation5], 0  ;;  %s726_s0 = inlined_call_operand.vmem [shape: f32[8,128], index: 0, kind: input, shape index: {}]   ;;  %s727_s1 = inlined_call_operand.vmem [shape: f32[128,128], index: 1, kind: input, shape index: {}]   ;;  %s728_s2 = inlined_call_operand.vmem [shape: f32[1,128], index: 2, kind: input, shape index: {}]   ;;  %s729_s3 = inlined_call_operand.vmem [shape: f32[128,8], index: 3, kind: input, shape index: {}]   ;;  %s730_s4 = inlined_call_operand.hbm [shape: f32[8,128], index: 4, kind: input, shape index: {}]   ;;  %s731_s5 = inlined_call_operand.hbm [shape: f32[8,128], index: 5, kind: output, shape index: {}]  }
   0x1   :  { %11 = vsyncpa [#allocation6], 0  ;;  %s538_s18 = smov [#allocation4]   ;;  %s490_s22 = scalar_lea.hbm %s730_s4, 128 }
   0x2   :  { %s26_s19 = sshll.u32 %s538_s18, 4  ;;  %p491_p0 = scmp.ne.s32.totalorder %s730_s4, %s490_s22  ;;  %s27_s19 = int_to_ptr.vmem [resolvable:$true] %s26_s19 }
   0x3   :  { %p494_p1 = scmp.lt.u32.totalorder %s490_s22, %s730_s4 }
   0x5   :  { %p496_p2 = pnand %p494_p1, %p491_p0 }
   0x7   :  { %499 = shalt.err (!%p496_p2)
}
   0x8   :  { %s500_s27 = scalar_lea.vmem %s27_s19, 128  ;;  %p505_p4 = scmp.lt.s32.totalorder %s27_s19, %s27_s19 }
   0x9   :  { %p501_p3 = scmp.ne.s32.totalorder %s27_s19, %s500_s27  ;;  %p506_p5 = scmp.lt.s32.totalorder %s500_s27, %s500_s27 }
   0xb   :  { %p507_p6 = por %p506_p5, %p505_p4 }
   0xd   :  { %p508_p7 = pnand %p507_p6, %p501_p3 }
   0xf   :  { %511 = shalt.err (!%p508_p7)
}
  0x10   :  { %29 = dma.hbm_to_vmem [thread:$0]  %s730_s4, 128, %s27_s19, [#allocation5]  }
  0x11   :  { %534 = dma.done.wait [#allocation5], 128  }
  0x12   :  { %535 = vsyncadd [#allocation5], 4294967168  ;;  %vm38_vm0 = vcmask 64512   ;;  %v539_v0 = vmov 0.0|0.0   ;;  %vm540_vm1 = vmmov 0   ;;  %v541_v1 = vmov 0.0  }
  0x13   :  { %461 = vmatprep.subr.bf16.mxu1 %v539_v0  ;;  %429 = vmatprep.mubr.msk.f32.mxu1 %vm540_vm1, %v541_v1  ;;  %39 = vst.msk [vmem:[#allocation3] sm:$0xff] %vm38_vm0, %v541_v1  ;;  %v131_v2 = vld [vmem:[%s729_s3] sm:$0xff]  ;;  %v132_v3 = vld [vmem:[%s729_s3 + $0x8] sm:$0xff]  ;;  %v133_v4 = vld [vmem:[%s729_s3 + $0x10] sm:$0xff]  ;;  %s542_s17 = smov [#allocation7]  }
  0x14   :  { %437 = vmatprep.subr.bf16.mxu0 %v539_v0  ;;  %394 = vmatprep.mubr.msk.f32.mxu0 %vm540_vm1, %v541_v1  ;;  %v462_v5 = vpack.c.bf16 %v132_v3, %v131_v2  ;;  %v134_v6 = vld [vmem:[%s729_s3 + $0x18] sm:$0xff]  ;;  %v135_v8 = vld [vmem:[%s729_s3 + $0x20] sm:$0xff]  ;;  %v136_v9 = vld [vmem:[%s729_s3 + $0x28] sm:$0xff]  ;;  %s315_s18 = sshll.u32 %s542_s17, 4  ;;  %s316_s18 = int_to_ptr.vmem [resolvable:$true] %s315_s18 }
  0x15   :  { %v465_v7 = vpack.c.bf16 %v134_v6, %v133_v4  ;;  %v42_v10 = vld [vmem:[%s727_s1] sm:$0xff]  ;;  %v43_v11 = vld [vmem:[%s727_s1 + $0x8] sm:$0xff]  ;;  %v44_v12 = vld [vmem:[%s727_s1 + $0x10] sm:$0xff]  ;;  %v468_v14 = vpack.c.bf16 %v136_v9, %v135_v8  ;;  %s512_s19 = scalar_lea.vmem %s316_s18, 128  ;;  %p517_p9 = scmp.lt.s32.totalorder %s316_s18, %s316_s18 }
  0x16   :  { %463 = vmatpush3.bf16.msra.mxu1 %v462_v5  ;;  %v45_v13 = vld [vmem:[%s727_s1 + $0x18] sm:$0xff]  ;;  %v438_v15 = vpack.c.bf16 %v43_v11, %v42_v10  ;;  %v137_v16 = vld [vmem:[%s729_s3 + $0x30] sm:$0xff]  ;;  %v46_v19 = vld [vmem:[%s727_s1 + $0x20] sm:$0xff]  ;;  %p513_p8 = scmp.ne.s32.totalorder %s316_s18, %s512_s19  ;;  %p518_p10 = scmp.lt.s32.totalorder %s512_s19, %s512_s19 }
  0x17   :  { %464 = vmatprep.subr.bf16.mxu1 %v539_v0  ;;  %v138_v17 = vld [vmem:[%s729_s3 + $0x38] sm:$0xff]  ;;  %v441_v18 = vpack.c.bf16 %v45_v13, %v44_v12  ;;  %v47_v20 = vld [vmem:[%s727_s1 + $0x28] sm:$0xff]  ;;  %v139_v22 = vld [vmem:[%s729_s3 + $0x40] sm:$0xff] }
  0x18   :  { %439 = vmatpush3.bf16.msra.mxu0 %v438_v15  ;;  %v471_v21 = vpack.c.bf16 %v138_v17, %v137_v16  ;;  %v140_v23 = vld [vmem:[%s729_s3 + $0x48] sm:$0xff]  ;;  %v444_v24 = vpack.c.bf16 %v47_v20, %v46_v19  ;;  %v48_v25 = vld [vmem:[%s727_s1 + $0x30] sm:$0xff]  ;;  %v49_v26 = vld [vmem:[%s727_s1 + $0x38] sm:$0xff]  ;;  %p519_p11 = por %p518_p10, %p517_p9 }
  0x19   :  { %440 = vmatprep.subr.bf16.mxu0 %v539_v0  ;;  %v474_v27 = vpack.c.bf16 %v140_v23, %v139_v22  ;;  %v141_v28 = vld [vmem:[%s729_s3 + $0x50] sm:$0xff]  ;;  %v142_v29 = vld [vmem:[%s729_s3 + $0x58] sm:$0xff]  ;;  %v447_v30 = vpack.c.bf16 %v49_v26, %v48_v25  ;;  %v50_v31 = vld [vmem:[%s727_s1 + $0x40] sm:$0xff] }
  0x1a   :  { %466 = vmatpush3.bf16.msra.mxu1 %v465_v7  ;;  %v51_v32 = vld [vmem:[%s727_s1 + $0x48] sm:$0xff]  ;;  %v477_v33 = vpack.c.bf16 %v142_v29, %v141_v28  ;;  %v143_v34 = vld [vmem:[%s729_s3 + $0x60] sm:$0xff]  ;;  %v52_v37 = vld [vmem:[%s727_s1 + $0x50] sm:$0xff]  ;;  %p520_p12 = pnand %p519_p11, %p513_p8 }
  0x1b   :  { %467 = vmatprep.subr.bf16.mxu1 %v539_v0  ;;  %v144_v35 = vld [vmem:[%s729_s3 + $0x68] sm:$0xff]  ;;  %v450_v36 = vpack.c.bf16 %v51_v32, %v50_v31  ;;  %v53_v38 = vld [vmem:[%s727_s1 + $0x58] sm:$0xff]  ;;  %v145_v40 = vld [vmem:[%s729_s3 + $0x70] sm:$0xff] }
  0x1c   :  { %442 = vmatpush3.bf16.msra.mxu0 %v441_v18  ;;  %v480_v39 = vpack.c.bf16 %v144_v35, %v143_v34  ;;  %v146_v41 = vld [vmem:[%s729_s3 + $0x78] sm:$0xff]  ;;  %v453_v42 = vpack.c.bf16 %v53_v38, %v52_v37  ;;  %v54_v43 = vld [vmem:[%s727_s1 + $0x60] sm:$0xff]  ;;  %v55_v44 = vld [vmem:[%s727_s1 + $0x68] sm:$0xff] }
  0x1d   :  { %443 = vmatprep.subr.bf16.mxu0 %v539_v0  ;;  %v483_v45 = vpack.c.bf16 %v146_v41, %v145_v40  ;;  %v456_v46 = vpack.c.bf16 %v55_v44, %v54_v43  ;;  %v40_v47 = vld [vmem:[%s726_s0] sm:$0xff]  ;;  %v56_v48 = vld [vmem:[%s727_s1 + $0x70] sm:$0xff]  ;;  %v57_v49 = vld [vmem:[%s727_s1 + $0x78] sm:$0xff] }
  0x1e   :  { %469 = vmatpush3.bf16.msra.mxu1 %v468_v14  ;;  %v459_v50 = vpack.c.bf16 %v57_v49, %v56_v48  ;;  %v224_v51 = vld [vmem:[#allocation4] sm:$0xff]  ;;  %v130_v52 = vld [vmem:[#allocation3] sm:$0xff] }
  0x1f   :  { %470 = vmatprep.subr.bf16.mxu1 %v539_v0  ;;  %v325_v60 = vld [vmem:[%s728_s2] ss:$0 sm:$0xff] }
  0x20   :  { %445 = vmatpush3.bf16.msra.mxu0 %v444_v24 }
  0x21   :  { %446 = vmatprep.subr.bf16.mxu0 %v539_v0 }
  0x22   :  { %472 = vmatpush3.bf16.msra.mxu1 %v471_v21 }
  0x23   :  { %473 = vmatprep.subr.bf16.mxu1 %v539_v0 }
  0x24   :  { %448 = vmatpush3.bf16.msra.mxu0 %v447_v30 }
  0x25   :  { %449 = vmatprep.subr.bf16.mxu0 %v539_v0 }
  0x26   :  { %475 = vmatpush3.bf16.msra.mxu1 %v474_v27 }
  0x27   :  { %476 = vmatprep.subr.bf16.mxu1 %v539_v0 }
  0x28   :  { %451 = vmatpush3.bf16.msra.mxu0 %v450_v36 }
  0x29   :  { %452 = vmatprep.subr.bf16.mxu0 %v539_v0 }
  0x2a   :  { %478 = vmatpush3.bf16.msra.mxu1 %v477_v33 }
  0x2b   :  { %479 = vmatprep.subr.bf16.mxu1 %v539_v0 }
  0x2c   :  { %454 = vmatpush3.bf16.msra.mxu0 %v453_v42 }
  0x2d   :  { %455 = vmatprep.subr.bf16.mxu0 %v539_v0 }
  0x2e   :  { %481 = vmatpush3.bf16.msra.mxu1 %v480_v39 }
  0x2f   :  { %482 = vmatprep.subr.bf16.mxu1 %v539_v0 }
  0x30   :  { %457 = vmatpush3.bf16.msra.mxu0 %v456_v46 }
  0x31   :  { %458 = vmatprep.subr.bf16.mxu0 %v539_v0 }
  0x32   :  { %484 = vmatpush3.bf16.msra.mxu1 %v483_v45 }
  0x34   :  { %460 = vmatpush3.bf16.msra.mxu0 %v459_v50 }
  0x35   :  { %430 = vmatmul.mubr.f32.vlgmr.msra.gmra.mrb[0].mxu1 %v40_v47  ;;  %432 = vmatprep.subr.mxu0 %v541_v1 }
  0x37   :  { %395 = vmatmul.mubr.f32.vlgmr.msra.gmra.mrb[0].mxu0 %v40_v47 }
  0x38   :  { %433 = vmatpush3.msra.mxu0 %v224_v51  ;;  %434 = vmatprep.mubr.msk.f32.mxu0 %vm540_vm1, %v541_v1 }
 0x108   :  { %v213_v53 = vpop.f32.mrb[0].mxu1 }
 0x109   :  { %v217_v54 = vadd.f32 %v213_v53, %v130_v52  ;;  %v431_v55 = vpop.f32.mrb[1].mxu1 }
 0x10a   :  { %v124_v57 = vpop.f32.mrb[0].mxu0 }
 0x10b   :  { %219 = vst.msk [vmem:[#allocation3] sm:$0xff] %vm38_vm0, %v217_v54  ;;  %v396_v58 = vpop.f32.mrb[1].mxu0 }
 0x112   :  { %v223_v56 = vld [vmem:[#allocation3] sm:$0xff] }
 0x113   :  { %435 = vmatmul.mubr.msk.f32.vlgmr.msra.gmra.mrb[2].mxu0 %vm38_vm0, %v223_v56 }
 0x1e6   :  { %v294_v59 = vpop.f32.mrb[2].mxu0 }
 0x1e7   :  { %v299_v61 = vadd.f32 %v294_v59, %v124_v57  ;;  %v436_v62 = vpop.f32.mrb[3].mxu0 }
 0x1e9   :  { %v307_v63 = vadd.f32 %v325_v60, %v299_v61 }
 0x1eb   :  { %308 = vst [vmem:[#allocation7] sm:$0xff] %v307_v63 }
 0x1ec   :  { %523 = shalt.err (!%p520_p12)
}
 0x1ed   :  { %s524_s22 = scalar_lea.hbm %s731_s5, 128 }
 0x1ee   :  { %p525_p13 = scmp.ne.s32.totalorder %s731_s5, %s524_s22  ;;  %p528_p0 = scmp.lt.u32.totalorder %s524_s22, %s731_s5 }
 0x1f0   :  { %p530_p1 = pnand %p528_p0, %p525_p13 }
 0x1f2   :  { %533 = shalt.err (!%p530_p1)
}
 0x1f3   :  { %318 = dma.vmem_to_hbm [thread:$0]  %s316_s18, 128, %s731_s5, [#allocation6]  }
 0x1f4   :  { %536 = dma.done.wait [#allocation6], 128  }
 0x1f5   :  { %537 = vsyncadd [#allocation6], 4294967168 }
 0x1f6   :  { %322 = vsyncpa [#allocation5], 1 }
 0x1f7   :  { %323 = vsyncpa [#allocation6], 1 }

</bundles_post_ra>
